<compile_context>
chip_gen: v7x
topology: tpu7x:2x2x1
jax: 0.10.0
libtpu: 0.0.40
codegen_flags: <defaults>
</compile_context>

<pallas_src>
import functools

import jax
import jax.numpy as jnp
from jax.experimental import pallas as pl
from jax.experimental.pallas import tpu as pltpu

_NEG_BIG = -1e30  # bias for padded action columns -> exp underflows to exactly 0


def _round_up(x: int, m: int) -> int:
    return ((x + m - 1) // m) * m


def policy_net_kernel(x_ref, w1_ref, b1_ref, w2_ref, b2_ref, o_ref):
    # Two MXU matmuls + VPU relu + EUP exp/reciprocal + XLU lane reductions.
    x = x_ref[...]                                                      # (TB, I)
    h = jnp.dot(x, w1_ref[...], preferred_element_type=jnp.float32)     # (TB, H)
    h = jnp.maximum(h + b1_ref[...], 0.0)                               # relu
    logits = jnp.dot(h, w2_ref[...], preferred_element_type=jnp.float32)
    logits = logits + b2_ref[...]                                       # (TB, A_pad)
    # Numerically-stable softmax over actions. Padded columns carry a -1e30
    # bias, so their exp is exactly 0 and they do not perturb max/sum.
    m = jnp.max(logits, axis=-1, keepdims=True)
    e = jnp.exp(logits - m)
    denom = jnp.sum(e, axis=-1, keepdims=True)
    probs = e * pl.reciprocal(denom, approx=True)
    o_ref[...] = probs.astype(o_ref.dtype)


@functools.partial(jax.jit, static_argnames=("block_b",))
def policy_network_forward(state, w1, b1, w2, b2, *, block_b: int = 512):
    """state: (B, I) f32; w1: (I, H); b1: (1, H); w2: (H, A); b2: (1, A) -> (B, A)."""
    B, I = state.shape
    H, A = w2.shape

    # ---- lane-pad the action dim so the output store is unmasked / lane-dense.
    A_pad = _round_up(A, 128)
    if A_pad != A:
        w2 = jnp.pad(w2, ((0, 0), (0, A_pad - A)))
        b2 = jnp.pad(b2, ((0, 0), (0, A_pad - A)), constant_values=_NEG_BIG)

    # ---- tile the batch dimension (sublane multiple of 8), pad B if needed.
    tb = max(8, _round_up(min(block_b, _round_up(B, 8)), 8))
    B_pad = _round_up(B, tb)
    if B_pad != B:
        state = jnp.pad(state, ((0, B_pad - B), (0, 0)))
    grid = (B_pad // tb,)

    cost = pl.CostEstimate(
        flops=2 * B_pad * (I * H + H * A_pad),
        transcendentals=B_pad * A_pad,
        bytes_accessed=4 * (B_pad * I + I * H + H + H * A_pad + A_pad + B_pad * A_pad),
    )

    out = pl.pallas_call(
        policy_net_kernel,
        out_shape=jax.ShapeDtypeStruct((B_pad, A_pad), jnp.float32),
        grid=grid,
        in_specs=[
            pl.BlockSpec((tb, I), lambda i: (i, 0)),      # state: streamed per batch tile
            pl.BlockSpec((I, H), lambda i: (0, 0)),       # w1: VMEM-resident
            pl.BlockSpec((1, H), lambda i: (0, 0)),       # b1: VMEM-resident
            pl.BlockSpec((H, A_pad), lambda i: (0, 0)),   # w2: VMEM-resident
            pl.BlockSpec((1, A_pad), lambda i: (0, 0)),   # b2: VMEM-resident
        ],
        out_specs=pl.BlockSpec((tb, A_pad), lambda i: (i, 0)),
        compiler_params=pltpu.CompilerParams(
            dimension_semantics=("parallel",),
        ),
        cost_estimate=cost,
    )(state, w1, b1, w2, b2)

    return out[:B, :A]


def init_params(key, num_inputs, num_actions, hidden_size):
    """Deterministic init mirroring nn.Linear default (uniform +/- 1/sqrt(fan_in)).

    Weights are stored transposed relative to PyTorch: (in_features, out_features).
    """
    k1, k2, k3, k4 = jax.random.split(key, 4)
    bound1 = 1.0 / jnp.sqrt(num_inputs)
    bound2 = 1.0 / jnp.sqrt(hidden_size)
    w1 = jax.random.uniform(k1, (num_inputs, hidden_size), jnp.float32, -bound1, bound1)
    b1 = jax.random.uniform(k2, (1, hidden_size), jnp.float32, -bound1, bound1)
    w2 = jax.random.uniform(k3, (hidden_size, num_actions), jnp.float32, -bound2, bound2)
    b2 = jax.random.uniform(k4, (1, num_actions), jnp.float32, -bound2, bound2)
    return w1, b1, w2, b2


def reference_forward(state, w1, b1, w2, b2):
    h = jnp.maximum(state @ w1 + b1, 0.0)
    return jax.nn.softmax(h @ w2 + b2, axis=-1)


# TODO(synk): Adam optimizer state and get_action's host-side categorical sampling
# are not part of the forward pass and are left out of the kernel.

if __name__ == "__main__":
    # CartPole-v0: num_inputs=4 (observation), num_actions=2, hidden_size=256
    # (matching the module's global). batch=16 with block_b=8 exercises grid=(2,).
    batch, num_inputs, num_actions, hidden_size = 16, 4, 2, 256

    key = jax.random.PRNGKey(0)
    k_state, k_params = jax.random.split(key)
    state = jax.random.normal(k_state, (batch, num_inputs), jnp.float32)
    w1, b1, w2, b2 = init_params(k_params, num_inputs, num_actions, hidden_size)

    probs = policy_network_forward(state, w1, b1, w2, b2, block_b=8)
    probs = jax.block_until_ready(probs)

    assert probs.shape == (batch, num_actions)

    # sanity: rows of a softmax sum to 1 (tolerance loosened for approx reciprocal)
    row_sums = jnp.sum(probs, axis=-1)
    assert bool(jnp.all(jnp.abs(row_sums - 1.0) < 1e-2)), row_sums

    # sanity: matches a pure-JAX reference of the same forward pass
    ref = reference_forward(state, w1, b1, w2, b2)
    assert bool(jnp.all(jnp.abs(probs - ref) < 2e-3)), jnp.max(jnp.abs(probs - ref))

    print("KERNEL_OK")
</pallas_src>

<mosaic_0001>
module attributes {stable_mosaic.version = 11 : i64} {
  func.func @policy_net_kernel(%arg0: i32, %arg1: memref<8x4xf32, #tpu.memory_space<vmem>>, %arg2: memref<4x256xf32, #tpu.memory_space<vmem>>, %arg3: memref<1x256xf32, #tpu.memory_space<vmem>>, %arg4: memref<256x128xf32, #tpu.memory_space<vmem>>, %arg5: memref<1x128xf32, #tpu.memory_space<vmem>>, %arg6: memref<8x128xf32, #tpu.memory_space<vmem>>) attributes {dimension_semantics = [#tpu.dimension_semantics<parallel>], iteration_bounds = array<i64: 2>, scalar_prefetch = 0 : i64, scratch_operands = 0 : i64, tpu.core_type = #tpu.core_type<tc>, window_params = [{transform_indices = @transform_0, window_bounds = array<i64: 8, 4>}, {pipeline_mode = #tpu.pipeline_mode<synchronous>, transform_indices = @transform_1, window_bounds = array<i64: 4, 256>}, {pipeline_mode = #tpu.pipeline_mode<synchronous>, transform_indices = @transform_2, window_bounds = array<i64: 1, 256>}, {pipeline_mode = #tpu.pipeline_mode<synchronous>, transform_indices = @transform_3, window_bounds = array<i64: 256, 128>}, {pipeline_mode = #tpu.pipeline_mode<synchronous>, transform_indices = @transform_4, window_bounds = array<i64: 1, 128>}, {transform_indices = @transform_5, window_bounds = array<i64: 8, 128>}]} {
    %c0 = arith.constant 0 : index
    %c0_0 = arith.constant 0 : index
    %0 = vector.load %arg1[%c0, %c0_0] : memref<8x4xf32, #tpu.memory_space<vmem>>, vector<8x4xf32>
    %c0_1 = arith.constant 0 : index
    %c0_2 = arith.constant 0 : index
    %1 = vector.load %arg2[%c0_1, %c0_2] : memref<4x256xf32, #tpu.memory_space<vmem>>, vector<4x256xf32>
    %cst = arith.constant dense<0.000000e+00> : vector<8x256xf32>
    %2 = tpu.matmul %0, %1, %cst {dimension_numbers = #tpu.dot_dimension_numbers<[1], [0], [0], [1], [0, 0, 1, 1], [], []>} : vector<8x4xf32>, vector<4x256xf32>, vector<8x256xf32> -> vector<8x256xf32>
    %c0_3 = arith.constant 0 : index
    %c0_4 = arith.constant 0 : index
    %3 = vector.load %arg3[%c0_3, %c0_4] : memref<1x256xf32, #tpu.memory_space<vmem>>, vector<1x256xf32>
    %4 = vector.broadcast %3 : vector<1x256xf32> to vector<8x256xf32>
    %5 = arith.addf %2, %4 : vector<8x256xf32>
    %cst_5 = arith.constant 0.000000e+00 : f32
    %6 = vector.broadcast %cst_5 : f32 to vector<8x256xf32>
    %7 = arith.maximumf %5, %6 : vector<8x256xf32>
    %c0_6 = arith.constant 0 : index
    %c0_7 = arith.constant 0 : index
    %8 = vector.load %arg4[%c0_6, %c0_7] : memref<256x128xf32, #tpu.memory_space<vmem>>, vector<256x128xf32>
    %cst_8 = arith.constant dense<0.000000e+00> : vector<8x128xf32>
    %9 = tpu.matmul %7, %8, %cst_8 {dimension_numbers = #tpu.dot_dimension_numbers<[1], [0], [0], [1], [0, 0, 1, 1], [], []>} : vector<8x256xf32>, vector<256x128xf32>, vector<8x128xf32> -> vector<8x128xf32>
    %c0_9 = arith.constant 0 : index
    %c0_10 = arith.constant 0 : index
    %10 = vector.load %arg5[%c0_9, %c0_10] : memref<1x128xf32, #tpu.memory_space<vmem>>, vector<1x128xf32>
    %11 = vector.broadcast %10 : vector<1x128xf32> to vector<8x128xf32>
    %12 = arith.addf %9, %11 : vector<8x128xf32>
    %cst_11 = arith.constant dense<0xFF800000> : vector<8xf32>
    %13 = vector.multi_reduction <maximumf>, %12, %cst_11 [1] : vector<8x128xf32> to vector<8xf32>
    %14 = vector.shape_cast %13 : vector<8xf32> to vector<8x1xf32>
    %15 = vector.broadcast %14 : vector<8x1xf32> to vector<8x128xf32>
    %16 = arith.subf %12, %15 : vector<8x128xf32>
    %17 = math.exp %16 : vector<8x128xf32>
    %cst_12 = arith.constant dense<0.000000e+00> : vector<8xf32>
    %18 = vector.multi_reduction <add>, %17, %cst_12 [1] : vector<8x128xf32> to vector<8xf32>
    %19 = vector.shape_cast %18 : vector<8xf32> to vector<8x1xf32>
    %20 = tpu.reciprocal %19 {approx = true} : vector<8x1xf32> -> vector<8x1xf32>
    %21 = vector.broadcast %20 : vector<8x1xf32> to vector<8x128xf32>
    %22 = arith.mulf %17, %21 : vector<8x128xf32>
    %c0_13 = arith.constant 0 : index
    %c0_14 = arith.constant 0 : index
    %23 = vector.load %arg6[%c0_13, %c0_14] : memref<8x128xf32, #tpu.memory_space<vmem>>, vector<8x128xf32>
    tpu.vector_store %arg6[%c0_13, %c0_14], %22 {strides = array<i32>} : memref<8x128xf32, #tpu.memory_space<vmem>>, vector<8x128xf32>,
    return
  }
  func.func @transform_0(%arg0: i32) -> (i32, i32) {
    %c0_i32 = arith.constant 0 : i32
    %c0_i32_0 = arith.constant 0 : i32
    return %arg0, %c0_i32 : i32, i32
  }
  func.func @transform_1(%arg0: i32) -> (i32, i32) {
    %c0_i32 = arith.constant 0 : i32
    %c0_i32_0 = arith.constant 0 : i32
    %c0_i32_1 = arith.constant 0 : i32
    return %c0_i32, %c0_i32_0 : i32, i32
  }
  func.func @transform_2(%arg0: i32) -> (i32, i32) {
    %c0_i32 = arith.constant 0 : i32
    %c0_i32_0 = arith.constant 0 : i32
    %c0_i32_1 = arith.constant 0 : i32
    return %c0_i32, %c0_i32_0 : i32, i32
  }
  func.func @transform_3(%arg0: i32) -> (i32, i32) {
    %c0_i32 = arith.constant 0 : i32
    %c0_i32_0 = arith.constant 0 : i32
    %c0_i32_1 = arith.constant 0 : i32
    return %c0_i32, %c0_i32_0 : i32, i32
  }
  func.func @transform_4(%arg0: i32) -> (i32, i32) {
    %c0_i32 = arith.constant 0 : i32
    %c0_i32_0 = arith.constant 0 : i32
    %c0_i32_1 = arith.constant 0 : i32
    return %c0_i32, %c0_i32_0 : i32, i32
  }
  func.func @transform_5(%arg0: i32) -> (i32, i32) {
    %c0_i32 = arith.constant 0 : i32
    %c0_i32_0 = arith.constant 0 : i32
    return %arg0, %c0_i32 : i32, i32
  }
}

</mosaic_0001>

<bundles_post_ra>
// kernel: policy_network_forward.1
= control target key start
LH: loop header
LB: loop body
LE: loop exit
PB: predicated region body
PF: predicated region fallthrough
CT: control target
= control target key end

     0   :  { %s623_s18 = smov 0   ;;  %s754_s0 = inlined_call_operand.vmem [shape: f32[16,4], index: 0, kind: input, shape index: {}]   ;;  %s755_s1 = inlined_call_operand.vmem [shape: f32[4,256], index: 1, kind: input, shape index: {}]   ;;  %s756_s2 = inlined_call_operand.vmem [shape: f32[1,256], index: 2, kind: input, shape index: {}]   ;;  %s757_s3 = inlined_call_operand.vmem [shape: f32[256,128], index: 3, kind: input, shape index: {}]   ;;  %s758_s4 = inlined_call_operand.vmem [shape: f32[1,128], index: 4, kind: input, shape index: {}]   ;;  %s759_s5 = inlined_call_operand.vmem [shape: f32[16,128], index: 5, kind: output, shape index: {}]  }
   0x1 LB: > { %s490_s19 = sadd.s32 4294967295, %s590_s18   ;;  %p494_p0 = scmp.ge.s32.totalorder %s590_s18, 1  ;;  %s590_s18 = sphi %s623_s18, %s15_s18  }
   0x2   : > { %p186_p1 = scmp.lt.s32.totalorder %s590_s18, 3 }
   0x4   : > { %p187_p2 = pnand %p494_p0, %p186_p1 }
   0x5   : > { %v221_v0 = vld [vmem:[%s755_s1] sm:$0xff] (!%p187_p2)  ;;  %vm240_vm0 = vcmask (!%p187_p2), 1043456   ;;  %p212_p3 = scmp.lt.s32.totalorder (!%p187_p2), %s490_s19, 1  ;;  %v592_v3 = vmov (!%p187_p2), 0.0   ;;  %v335_v4 = vld [vmem:[%s757_s3 + $0x88] sm:$0xff] (!%p187_p2)  ;;  %v336_v9 = vld [vmem:[%s757_s3 + $0x90] sm:$0xff] (!%p187_p2)  ;;  %v224_v52 = vlaneseq (!%p187_p2) }
   0x6   : > { %190 = sbr.rel (%p187_p2) target bundleno = 765 (0x2fd), region = 40  ;;  %v334_v1 = vld [vmem:[%s757_s3 + $0x80] sm:$0xff] (!%p187_p2)  ;;  %v235_v2 = vcombine.high (!%p187_p2), %v221_v0, %v221_v0  ;;  %309 = vmatprep.mubr.f32.mxu0 (!%p187_p2), %v592_v3  ;;  %v319_v6 = vld [vmem:[%s757_s3 + $0x8] sm:$0xff] (!%p187_p2)  ;;  %v337_v10 = vld [vmem:[%s757_s3 + $0x98] sm:$0xff] (!%p187_p2)  ;;  %vm236_vm1 = vcmask (!%p187_p2), 31744  }
   0x7   : > { %v318_v5 = vld [vmem:[%s757_s3] sm:$0xff] (!%p187_p2)  ;;  %v538_v7 = vpack.c.bf16 (!%p187_p2), %v335_v4, %v334_v1  ;;  %v320_v11 = vld [vmem:[%s757_s3 + $0x10] sm:$0xff] (!%p187_p2)  ;;  %v542_v12 = vpack.c.bf16 (!%p187_p2), %v337_v10, %v336_v9  ;;  %v321_v13 = vld [vmem:[%s757_s3 + $0x18] sm:$0xff] (!%p187_p2)  ;;  %v225_v53 = vshrl.u32 (!%p187_p2), %v224_v52, 7 }
   0x8   : > { %v540_v8 = vpack.c.bf16 (!%p187_p2), %v319_v6, %v318_v5  ;;  %497 = vmatprep.subr.msk.mxu0 (!%p187_p2), %vm240_vm0, %v235_v2  ;;  %v338_v14 = vld [vmem:[%s757_s3 + $0xa0] sm:$0xff] (!%p187_p2)  ;;  %v339_v15 = vld [vmem:[%s757_s3 + $0xa8] sm:$0xff] (!%p187_p2)  ;;  %v544_v16 = vpack.c.bf16 (!%p187_p2), %v321_v13, %v320_v11  ;;  %v340_v21 = vld [vmem:[%s757_s3 + $0xb0] sm:$0xff] (!%p187_p2) }
   0x9   : > { %498 = vmatpush1.msk.msra.mxu0 (!%p187_p2), %vm240_vm0, %v221_v0  ;;  %539 = vmatprep.subr.bf16.mxu1 (!%p187_p2), %v538_v7  ;;  %v546_v18 = vpack.c.bf16 (!%p187_p2), %v339_v15, %v338_v14  ;;  %v322_v19 = vld [vmem:[%s757_s3 + $0x20] sm:$0xff] (!%p187_p2)  ;;  %v323_v20 = vld [vmem:[%s757_s3 + $0x28] sm:$0xff] (!%p187_p2)  ;;  %v341_v22 = vld [vmem:[%s757_s3 + $0xb8] sm:$0xff] (!%p187_p2)  ;;  %v226_v54 = vsub.s32 (!%p187_p2), 0, %v225_v53  ;;  %v230_v56 = vsub.s32 (!%p187_p2), 1, %v225_v53 }
   0xa   : > { %541 = vmatpush3.bf16.msra.mxu1 (!%p187_p2), %v540_v8  ;;  %v548_v23 = vpack.c.bf16 (!%p187_p2), %v323_v20, %v322_v19  ;;  %v550_v24 = vpack.c.bf16 (!%p187_p2), %v341_v22, %v340_v21  ;;  %v324_v25 = vld [vmem:[%s757_s3 + $0x30] sm:$0xff] (!%p187_p2)  ;;  %v325_v26 = vld [vmem:[%s757_s3 + $0x38] sm:$0xff] (!%p187_p2)  ;;  %v342_v27 = vld [vmem:[%s757_s3 + $0xc0] sm:$0xff] (!%p187_p2) }
   0xb   : > { %543 = vmatprep.subr.bf16.mxu1 (!%p187_p2), %v542_v12  ;;  %v343_v28 = vld [vmem:[%s757_s3 + $0xc8] sm:$0xff] (!%p187_p2)  ;;  %v552_v29 = vpack.c.bf16 (!%p187_p2), %v325_v26, %v324_v25  ;;  %v326_v31 = vld [vmem:[%s757_s3 + $0x40] sm:$0xff] (!%p187_p2)  ;;  %v344_v33 = vld [vmem:[%s757_s3 + $0xd0] sm:$0xff] (!%p187_p2) }
   0xc   : > { %v554_v30 = vpack.c.bf16 (!%p187_p2), %v343_v28, %v342_v27  ;;  %v327_v32 = vld [vmem:[%s757_s3 + $0x48] sm:$0xff] (!%p187_p2)  ;;  %v345_v34 = vld [vmem:[%s757_s3 + $0xd8] sm:$0xff] (!%p187_p2)  ;;  %v328_v37 = vld [vmem:[%s757_s3 + $0x50] sm:$0xff] (!%p187_p2) }
   0xd   : > { %s761_s19 = smov (!%p212_p3, %s490_s19), 1  ;;  %v556_v35 = vpack.c.bf16 %v327_v32, %v326_v31  ;;  %v558_v36 = vpack.c.bf16 %v345_v34, %v344_v33  ;;  %v329_v38 = vld [vmem:[%s757_s3 + $0x58] sm:$0xff]  ;;  %v346_v39 = vld [vmem:[%s757_s3 + $0xe0] sm:$0xff]  ;;  %v347_v40 = vld [vmem:[%s757_s3 + $0xe8] sm:$0xff] }
   0xe   : > { %s495_s17 = sshll.u32 %s761_s19, 3  ;;  %545 = vmatpush3.bf16.msra.mxu1 %v544_v16  ;;  %v560_v41 = vpack.c.bf16 %v329_v38, %v328_v37  ;;  %v562_v42 = vpack.c.bf16 %v347_v40, %v346_v39  ;;  %v330_v43 = vld [vmem:[%s757_s3 + $0x60] sm:$0xff]  ;;  %v331_v44 = vld [vmem:[%s757_s3 + $0x68] sm:$0xff]  ;;  %v348_v46 = vld [vmem:[%s757_s3 + $0xf0] sm:$0xff] }
   0xf   : > { %s215_s22 = scalar_lea.vmem %s754_s0, %s495_s17  ;;  %547 = vmatprep.subr.bf16.mxu1 %v546_v18  ;;  %v564_v45 = vpack.c.bf16 %v331_v44, %v330_v43  ;;  %v349_v47 = vld [vmem:[%s757_s3 + $0xf8] sm:$0xff]  ;;  %v332_v49 = vld [vmem:[%s757_s3 + $0x70] sm:$0xff]  ;;  %v222_v55 = vld [vmem:[%s756_s2] sm:$0x3]  ;;  %s219_s29 = scalar_lea.vmem %s759_s5, %s495_s17 }
  0x10   : > { %v220_v17 = vld [vmem:[%s215_s22] sm:$0xff]  ;;  %v566_v48 = vpack.c.bf16 %v349_v47, %v348_v46  ;;  %v333_v50 = vld [vmem:[%s757_s3 + $0x78] sm:$0xff]  ;;  %v227_v57 = vrot.slane %v222_v55, %v226_v54  ;;  %v231_v58 = vrot.slane %v222_v55, %v230_v56 }
  0x11   : > { %499 = vmatmul.mubr.msk.f32.vlgmr.msra.gmra.mrb[0].mxu0 %vm236_vm1, %v220_v17  ;;  %v568_v51 = vpack.c.bf16 %v333_v50, %v332_v49  ;;  %v500_v3 = vld [vmem:[%s758_s4] ss:$0 sm:$0xff] }
  0x12   : > { %549 = vmatpush3.bf16.msra.mxu1 %v548_v23 }
  0x13   : > { %551 = vmatprep.subr.bf16.mxu1 %v550_v24 }
  0x16   : > { %553 = vmatpush3.bf16.msra.mxu1 %v552_v29 }
  0x17   : > { %555 = vmatprep.subr.bf16.mxu1 %v554_v30 }
  0x1a   : > { %557 = vmatpush3.bf16.msra.mxu1 %v556_v35 }
  0x1b   : > { %559 = vmatprep.subr.bf16.mxu1 %v558_v36 }
  0x1e   : > { %561 = vmatpush3.bf16.msra.mxu1 %v560_v41 }
  0x1f   : > { %563 = vmatprep.subr.bf16.mxu1 %v562_v42 }
  0x22   : > { %565 = vmatpush3.bf16.msra.mxu1 %v564_v45 }
  0x23   : > { %567 = vmatprep.subr.bf16.mxu1 %v566_v48 }
  0x26   : > { %569 = vmatpush3.bf16.msra.mxu1 %v568_v51 }
  0xe4   : > { %v311_v59 = vpop.f32.mrb[0].mxu0 }
  0xe5   : > { %v312_v60 = vadd.f32 %v311_v59, %v227_v57  ;;  %v313_v61 = vpop.f32.mrb[1].mxu0 }
  0xe6   : > { %v314_v62 = vadd.f32 %v313_v61, %v231_v58 }
  0xe7   : > { %v316_v0 = vmax.f32 %v312_v60, 0.0 }
  0xe8   : > { %v317_v63 = vmax.f32 %v314_v62, 0.0 }
  0xea   : > { %421 = vmatprep.mubr.f32.mxu1 %v317_v63 }
  0xeb   : > { %422 = vmatmul.mubr.f32.vlgmr.msra.gmra.mrb[0].mxu1 %v316_v0 }
 0x1be   : > { %v535_v1 = vpop.f32.mrb[0].mxu1 }
 0x1bf   : > { %v536_v2 = vpop.f32.mrb[1].mxu1 }
 0x1c0   : > { %v537_v4 = vadd.f32 %v536_v2, %v535_v1 }
 0x1c2   : > { %v424_v5 = vadd.f32 %v537_v4, %v500_v3 }
 0x1c4   : > { %427 = vmax.xlane.f32.xlu0 %v424_v5 }
 0x251   : > { %v428_v6 = vpop.xlane.xlu0 %427 }
 0x252   : > { %v429_v7 = vsub.f32 %v424_v5, %v428_v6 }
 0x254   : > { %v430_v8 = vmul.f32 1.442695, %v429_v7 }
 0x256   : > { %580 = vpow2.f32 %v430_v8 }
 0x260   : > { %v581_v9 = vpop.eup %580 }
 0x261   : > { %432 = vadd.xlane.f32.xlu0 %v581_v9 }
 0x2ee   : > { %v433_v10 = vpop.xlane.xlu0 %432 }
 0x2ef   : > { %582 = vrcp.f32 %v433_v10 }
 0x2f9   : > { %v583_v11 = vpop.eup %582 }
 0x2fa   : > { %v435_v12 = vmul.f32 %v583_v11, %v581_v9 }
 0x2fc   : > { %436 = vst [vmem:[%s219_s29] sm:$0xff] %v435_v12 }
 0x2fd PF: > { %s15_s18 = sadd.s32 1, %s590_s18  }
 0x2fe   : > { %p12_p4 = scmp.ge.s32.totalorder %s15_s18, 4  }
 0x300   :  { %14 = sbr.rel (!%p12_p4) target bundleno = 1 (0x1), region = 70 }

</bundles_post_ra>
